<compile_context>
chip_gen: v7x
topology: tpu7x:2x2x1
jax: 0.10.0
libtpu: 0.0.40
codegen_flags: <defaults>
</compile_context>

<pallas_src>
import functools
import math

import jax
import jax.numpy as jnp
from jax.experimental import pallas as pl
from jax.experimental.pallas import tpu as pltpu


_LANE = 128
_FAST_PATH_BYTES = 8 * 1024 * 1024      # single-block path if footprint <= this
_TILE_VMEM_BUDGET = 24 * 1024 * 1024    # working-set budget for the tiled path


def _round_up(x, m):
    return ((x + m - 1) // m) * m


def _pick_tile(dim, candidates=(512, 256, 128)):
    """Largest tile: whole dim if small, else biggest candidate dividing it."""
    if dim <= candidates[0]:
        return dim
    for t in candidates:
        if dim % t == 0:
            return t
    return _LANE


def _shrink_tile(t, dim):
    """Next smaller 128-multiple tile that still divides `dim`."""
    c = (t // 2) // _LANE * _LANE
    while c >= _LANE:
        if dim % c == 0:
            return c
        c -= _LANE
    return t


def _single_block_gcn_kernel(x_ref, w_ref, adj_ref, bias_ref, o_ref, *, add_bias):
    """out = adj @ (x @ W) (+ bias); everything VMEM-resident, no grid."""
    support = jnp.dot(x_ref[...], w_ref[...], preferred_element_type=jnp.float32)
    out = jnp.dot(adj_ref[...], support.astype(adj_ref.dtype),
                  preferred_element_type=jnp.float32)
    if add_bias:
        out = out + bias_ref[...].astype(jnp.float32)
    o_ref[...] = out.astype(o_ref.dtype)


def _tiled_mm_kernel(a_ref, b_ref, bias_ref, o_ref, *scratch, add_bias, use_acc):
    """o[i, j] = sum_k a[i, k] @ b[k, j]  (+ bias[j] fused at the last k step)."""
    # f32 output: accumulate directly into the VMEM-resident output block
    # (its block index is constant across the k axis) and skip the scratch.
    acc_ref = scratch[0] if use_acc else o_ref
    k = pl.program_id(2)

    @pl.when(k == 0)
    def _():
        acc_ref[...] = jnp.zeros_like(acc_ref)

    acc_ref[...] += jnp.dot(a_ref[...], b_ref[...],
                            preferred_element_type=jnp.float32)

    if add_bias or use_acc:
        @pl.when(k == pl.num_programs(2) - 1)
        def _():
            res = acc_ref[...]
            if add_bias:
                res = res + bias_ref[...].astype(jnp.float32)
            o_ref[...] = res.astype(o_ref.dtype)


def _matmul_bias(a, b, bias2d, *, out_dtype, add_bias):
    """Tiled Pallas matmul: a[M,K] @ b[K,N] (+ bias2d[1,N]).  M, K, N % 128 == 0."""
    M, K = a.shape
    K2, N = b.shape
    assert K == K2 and bias2d.shape == (1, N)
    out_dtype = jnp.dtype(out_dtype)
    use_acc = out_dtype != jnp.dtype(jnp.float32)

    tm = _pick_tile(M)
    tn = _pick_tile(N)      # keeps f_out whole when <= 512
    tk = _pick_tile(K)

    def footprint(tm_, tn_, tk_):
        f = 2 * tm_ * tk_ * a.dtype.itemsize          # a tile (double-buffered)
        f += 2 * tk_ * tn_ * b.dtype.itemsize         # b tile
        f += 2 * tn_ * bias2d.dtype.itemsize          # bias tile
        f += 2 * tm_ * tn_ * out_dtype.itemsize       # out tile
        if use_acc:
            f += tm_ * tn_ * 4                        # f32 accumulator scratch
        return f

    # Shrink tiles (reduction axis first) until the working set fits the
    # budget — matters most on v5e (16 MiB scoped default) and v7x (64 MiB).
    while footprint(tm, tn, tk) > _TILE_VMEM_BUDGET and tk > _LANE:
        tk = _shrink_tile(tk, K)
    while footprint(tm, tn, tk) > _TILE_VMEM_BUDGET and tm > _LANE:
        tm = _shrink_tile(tm, M)
    while footprint(tm, tn, tk) > _TILE_VMEM_BUDGET and tn > _LANE:
        tn = _shrink_tile(tn, N)

    fp = footprint(tm, tn, tk)
    # Computed footprint + generous headroom, never below the 32 MiB default
    # and never above 48 MiB (keeps v7x's 64 MiB physical VMEM safe).
    vmem_limit = int(min(max(2 * fp + (8 << 20), 32 << 20), 48 << 20))

    grid = (M // tm, N // tn, K // tk)
    scratch = [pltpu.VMEM((tm, tn), jnp.float32)] if use_acc else []
    kernel = functools.partial(_tiled_mm_kernel, add_bias=add_bias, use_acc=use_acc)

    return pl.pallas_call(
        kernel,
        out_shape=jax.ShapeDtypeStruct((M, N), out_dtype),
        grid=grid,
        in_specs=[
            pl.BlockSpec((tm, tk), lambda i, j, k: (i, k)),
            pl.BlockSpec((tk, tn), lambda i, j, k: (k, j)),
            pl.BlockSpec((1, tn), lambda i, j, k: (0, j)),
        ],
        out_specs=pl.BlockSpec((tm, tn), lambda i, j, k: (i, j)),
        scratch_shapes=scratch,
        compiler_params=pltpu.CompilerParams(
            dimension_semantics=("parallel", "parallel", "arbitrary"),
            vmem_limit_bytes=vmem_limit,
        ),
    )(a, b, bias2d)


def _graph_convolution_impl(x, adj, weight, bias, use_bf16_matmul=False):
    n, f_in = x.shape
    f_in_w, f_out = weight.shape
    assert f_in == f_in_w and adj.shape == (n, n)
    out_dtype = x.dtype
    has_bias = bias is not None

    n_p = _round_up(n, _LANE)
    f_in_p = _round_up(f_in, _LANE)
    f_out_p = _round_up(f_out, _LANE)

    # Pad only the arrays / dims that actually need it.
    x_p = x if (n_p == n and f_in_p == f_in) else jnp.pad(
        x, ((0, n_p - n), (0, f_in_p - f_in)))
    adj_p = adj if n_p == n else jnp.pad(adj, ((0, n_p - n), (0, n_p - n)))
    w_p = weight if (f_in_p == f_in and f_out_p == f_out) else jnp.pad(
        weight, ((0, f_in_p - f_in), (0, f_out_p - f_out)))
    if has_bias:
        b_p = bias.reshape(1, f_out)
        if f_out_p != f_out:
            b_p = jnp.pad(b_p, ((0, 0), (0, f_out_p - f_out)))
    else:
        b_p = jnp.zeros((1, f_out_p), out_dtype)

    # Optional bf16 MXU operands (accumulation stays f32 inside the kernels).
    if use_bf16_matmul:
        x_p = x_p.astype(jnp.bfloat16)
        w_p = w_p.astype(jnp.bfloat16)
        adj_p = adj_p.astype(jnp.bfloat16)

    # Single-block fast path for small graphs: no grid, no pipeline overhead.
    total_bytes = (x_p.size * x_p.dtype.itemsize
                   + w_p.size * w_p.dtype.itemsize
                   + adj_p.size * adj_p.dtype.itemsize
                   + b_p.size * b_p.dtype.itemsize
                   + 3 * n_p * f_out_p * 4)           # support + f32 out temps
    if total_bytes <= _FAST_PATH_BYTES:
        out_p = pl.pallas_call(
            functools.partial(_single_block_gcn_kernel, add_bias=has_bias),
            out_shape=jax.ShapeDtypeStruct((n_p, f_out_p), out_dtype),
            in_specs=[pl.BlockSpec(memory_space=pltpu.MemorySpace.VMEM)] * 4,
            out_specs=pl.BlockSpec(memory_space=pltpu.MemorySpace.VMEM),
        )(x_p, w_p, adj_p, b_p)
    else:
        # Stage 1: support = x @ W, computed exactly once (tiled).
        support_dtype = jnp.bfloat16 if use_bf16_matmul else out_dtype
        support = _matmul_bias(x_p, w_p, b_p, out_dtype=support_dtype,
                               add_bias=False)
        # Stage 2: out = adj @ support (+ bias), bias add fused into epilogue.
        out_p = _matmul_bias(adj_p, support, b_p, out_dtype=out_dtype,
                             add_bias=has_bias)

    if n_p != n or f_out_p != f_out:
        out_p = out_p[:n, :f_out]
    return out_p


graph_convolution = jax.jit(_graph_convolution_impl,
                            static_argnames=("use_bf16_matmul",))


def _reference(x, adj, weight, bias):
    support = jnp.dot(x, weight, precision="highest")
    out = jnp.dot(adj, support, precision="highest")
    return out if bias is None else out + bias


def _make_case(seed, n, f_in, f_out, p_edge=0.05):
    key = jax.random.PRNGKey(seed)
    k_x, k_adj, k_w, k_b = jax.random.split(key, 4)
    # Mirrors reset_parameters(): stdv = 1/sqrt(out_features), uniform(-stdv, stdv)
    stdv = 1.0 / math.sqrt(f_out)
    w = jax.random.uniform(k_w, (f_in, f_out), jnp.float32, -stdv, stdv)
    b = jax.random.uniform(k_b, (f_out,), jnp.float32, -stdv, stdv)
    x = jax.random.uniform(k_x, (n, f_in), dtype=jnp.float32)
    a = (jax.random.uniform(k_adj, (n, n)) < p_edge).astype(jnp.float32)
    a = a + jnp.eye(n, dtype=jnp.float32)          # self loops
    a = a / jnp.sum(a, axis=1, keepdims=True)      # row-normalize
    return x, a, w, b


if __name__ == "__main__":
    # Case 1: small, 128-aligned shapes (single-block fast path).
    n, fi, fo = 256, 128, 128
    x, a, w, b = _make_case(0, n, fi, fo, p_edge=0.1)
    out = jax.block_until_ready(graph_convolution(x, a, w, b))
    ref = _reference(x, a, w, b)
    assert out.shape == (n, fo)
    assert jnp.allclose(out, ref, atol=1e-4, rtol=1e-4), "mismatch (small)"

    # No-bias variant (exercises the bias=None path).
    out_nb = jax.block_until_ready(graph_convolution(x, a, w, None))
    assert jnp.allclose(out_nb, _reference(x, a, w, None),
                        atol=1e-4, rtol=1e-4), "mismatch (no bias)"

    # Case 2: non-128-aligned shapes (padding + fast path).
    x2, a2, w2, b2 = _make_case(1, 200, 96, 160, p_edge=0.1)
    out2 = jax.block_until_ready(graph_convolution(x2, a2, w2, b2))
    assert out2.shape == (200, 160)
    assert jnp.allclose(out2, _reference(x2, a2, w2, b2),
                        atol=1e-4, rtol=1e-4), "mismatch (padded)"

    # Case 3: larger graph -> two-stage tiled path (support computed once).
    x3, a3, w3, b3 = _make_case(2, 1500, 600, 256, p_edge=0.05)
    out3 = jax.block_until_ready(graph_convolution(x3, a3, w3, b3))
    ref3 = _reference(x3, a3, w3, b3)
    assert out3.shape == (1500, 256)
    assert jnp.allclose(out3, ref3, atol=2e-3, rtol=2e-3), "mismatch (tiled)"

    # Case 3 with bf16 MXU operands (f32 accumulation) — looser tolerance.
    out3_bf16 = jax.block_until_ready(
        graph_convolution(x3, a3, w3, b3, use_bf16_matmul=True))
    assert jnp.allclose(out3_bf16, ref3, atol=3e-2, rtol=3e-2), "mismatch (bf16)"

    print("KERNEL_OK")
</pallas_src>

<mosaic_0001>
module attributes {stable_mosaic.version = 11 : i64} {
  func.func @_single_block_gcn_kernel(%arg0: memref<256x128xf32, #tpu.memory_space<vmem>>, %arg1: memref<128x128xf32, #tpu.memory_space<vmem>>, %arg2: memref<256x256xf32, #tpu.memory_space<vmem>>, %arg3: memref<1x128xf32, #tpu.memory_space<vmem>>, %arg4: memref<256x128xf32, #tpu.memory_space<vmem>>) attributes {dimension_semantics = [], scalar_prefetch = 0 : i64, scratch_operands = 0 : i64, tpu.core_type = #tpu.core_type<tc>} {
    %c0 = arith.constant 0 : index
    %c0_0 = arith.constant 0 : index
    %0 = vector.load %arg0[%c0, %c0_0] : memref<256x128xf32, #tpu.memory_space<vmem>>, vector<256x128xf32>
    %c0_1 = arith.constant 0 : index
    %c0_2 = arith.constant 0 : index
    %1 = vector.load %arg1[%c0_1, %c0_2] : memref<128x128xf32, #tpu.memory_space<vmem>>, vector<128x128xf32>
    %cst = arith.constant dense<0.000000e+00> : vector<256x128xf32>
    %2 = tpu.matmul %0, %1, %cst {dimension_numbers = #tpu.dot_dimension_numbers<[1], [0], [0], [1], [0, 0, 1, 1], [], []>} : vector<256x128xf32>, vector<128x128xf32>, vector<256x128xf32> -> vector<256x128xf32>
    %c0_3 = arith.constant 0 : index
    %c0_4 = arith.constant 0 : index
    %3 = vector.load %arg2[%c0_3, %c0_4] : memref<256x256xf32, #tpu.memory_space<vmem>>, vector<256x256xf32>
    %cst_5 = arith.constant dense<0.000000e+00> : vector<256x128xf32>
    %4 = tpu.matmul %3, %2, %cst_5 {dimension_numbers = #tpu.dot_dimension_numbers<[1], [0], [0], [1], [0, 0, 1, 1], [], []>} : vector<256x256xf32>, vector<256x128xf32>, vector<256x128xf32> -> vector<256x128xf32>
    %c0_6 = arith.constant 0 : index
    %c0_7 = arith.constant 0 : index
    %5 = vector.load %arg3[%c0_6, %c0_7] : memref<1x128xf32, #tpu.memory_space<vmem>>, vector<1x128xf32>
    %6 = vector.broadcast %5 : vector<1x128xf32> to vector<256x128xf32>
    %7 = arith.addf %4, %6 : vector<256x128xf32>
    %c0_8 = arith.constant 0 : index
    %c0_9 = arith.constant 0 : index
    %8 = vector.load %arg4[%c0_8, %c0_9] : memref<256x128xf32, #tpu.memory_space<vmem>>, vector<256x128xf32>
    tpu.vector_store %arg4[%c0_8, %c0_9], %7 {strides = array<i32>} : memref<256x128xf32, #tpu.memory_space<vmem>>, vector<256x128xf32>,
    return
  }
}

</mosaic_0001>

<bundles_post_ra>
// kernel: _graph_convolution_impl.1
= control target key start
LH: loop header
LB: loop body
LE: loop exit
PB: predicated region body
PF: predicated region fallthrough
CT: control target
= control target key end

     0   :  { %9 = vsyncpa [#allocation3], 0  ;;  %s1189_s0 = inlined_call_operand.hbm [shape: f32[256,128], index: 0, kind: input, shape index: {}]   ;;  %s1190_s1 = inlined_call_operand.hbm [shape: f32[128,128], index: 1, kind: input, shape index: {}]   ;;  %s1191_s2 = inlined_call_operand.hbm [shape: f32[256,256], index: 2, kind: input, shape index: {}]   ;;  %s1192_s3 = inlined_call_operand.vmem [shape: f32[1,128], index: 3, kind: input, shape index: {}]   ;;  %s1193_s4 = inlined_call_operand.hbm [shape: f32[256,128], index: 4, kind: output, shape index: {}]  }
   0x1   :  { %10 = vsyncpa [#allocation6], 0 }
   0x2   :  { %11 = vsyncpa [#allocation4], 0  ;;  %s1022_s15 = smov [#allocation5]   ;;  %s1023_s17 = smov [#allocation2]  }
   0x3   :  { %s29_s16 = sshll.u32 %s1022_s15, 4  ;;  %s17_s18 = sshll.u32 %s1023_s17, 4  ;;  %s30_s16 = int_to_ptr.vmem [resolvable:$true] %s29_s16  ;;  %s1056_s18 = int_to_ptr.vmem [resolvable:$true] %s17_s18 }
   0x4   :  { %s928_s21 = scalar_lea.hbm %s1190_s1, 2048 }
   0x5   :  { %p929_p0 = scmp.ne.s32.totalorder %s1190_s1, %s928_s21  ;;  %p932_p1 = scmp.lt.u32.totalorder %s928_s21, %s1190_s1 }
   0x7   :  { %p934_p2 = pnand %p932_p1, %p929_p0 }
   0x9   :  { %937 = shalt.err (!%p934_p2)
}
   0xa   :  { %s938_s26 = scalar_lea.vmem %s30_s16, 2048  ;;  %p943_p4 = scmp.lt.s32.totalorder %s30_s16, %s30_s16 }
   0xb   :  { %p939_p3 = scmp.ne.s32.totalorder %s30_s16, %s938_s26  ;;  %p944_p5 = scmp.lt.s32.totalorder %s938_s26, %s938_s26 }
   0xd   :  { %p945_p6 = por %p944_p5, %p943_p4 }
   0xf   :  { %p946_p7 = pnand %p945_p6, %p939_p3 }
  0x11   :  { %949 = shalt.err (!%p946_p7)
}
  0x12   :  { %s1024_s27 = smov 128   ;;  %s1025_s28 = smov 8  }
  0x13   :  { %35 = dma.hbm_to_vmem [thread:$0]  %s1190_s1, 2048, %s30_s16, [#allocation6], %s1024_s27, %s1024_s27, %s1025_s28  }
  0x14   :  { %s950_s7 = scalar_lea.hbm %s1189_s0, 4096 }
  0x15   :  { %p951_p8 = scmp.ne.s32.totalorder %s1189_s0, %s950_s7  ;;  %p954_p9 = scmp.lt.u32.totalorder %s950_s7, %s1189_s0 }
  0x17   :  { %p956_p10 = pnand %p954_p9, %p951_p8 }
  0x19   :  { %959 = shalt.err (!%p956_p10)
}
  0x1a   :  { %s960_s12 = scalar_lea.vmem %s1056_s18, 4096  ;;  %p965_p12 = scmp.lt.s32.totalorder %s1056_s18, %s1056_s18 }
  0x1b   :  { %p961_p11 = scmp.ne.s32.totalorder %s1056_s18, %s960_s12  ;;  %p966_p13 = scmp.lt.s32.totalorder %s960_s12, %s960_s12 }
  0x1d   :  { %p967_p0 = por %p966_p13, %p965_p12 }
  0x1f   :  { %p968_p1 = pnand %p967_p0, %p961_p11 }
  0x21   :  { %971 = shalt.err (!%p968_p1)
}
  0x22   :  { %23 = dma.hbm_to_vmem [thread:$0]  %s1189_s0, 4096, %s1056_s18, [#allocation3], %s1024_s27, %s1024_s27, %s1025_s28  }
  0x23   :  { %s1026_s14 = smov [#allocation7]   ;;  %s972_s19 = scalar_lea.hbm %s1191_s2, 8192 }
  0x24   :  { %s41_s15 = sshll.u32 %s1026_s14, 4  ;;  %p973_p2 = scmp.ne.s32.totalorder %s1191_s2, %s972_s19  ;;  %s42_s15 = int_to_ptr.vmem [resolvable:$true] %s41_s15 }
  0x25   :  { %p976_p3 = scmp.lt.u32.totalorder %s972_s19, %s1191_s2 }
  0x27   :  { %p978_p4 = pnand %p976_p3, %p973_p2 }
  0x29   :  { %981 = shalt.err (!%p978_p4)
}
  0x2a   :  { %s982_s24 = scalar_lea.vmem %s42_s15, 8192  ;;  %p987_p6 = scmp.lt.s32.totalorder %s42_s15, %s42_s15 }
  0x2b   :  { %p983_p5 = scmp.ne.s32.totalorder %s42_s15, %s982_s24  ;;  %p988_p7 = scmp.lt.s32.totalorder %s982_s24, %s982_s24 }
  0x2d   :  { %p989_p8 = por %p988_p7, %p987_p6 }
  0x2f   :  { %p990_p9 = pnand %p989_p8, %p983_p5 }
  0x31   :  { %993 = shalt.err (!%p990_p9)
}
  0x32   :  { %s1027_s0 = smov 256   ;;  %s1028_s18 = smov 16  }
  0x33   :  { %47 = dma.hbm_to_vmem [thread:$0]  %s1191_s2, 8192, %s42_s15, [#allocation6], %s1027_s0, %s1027_s0, %s1028_s18  }
  0x34   :  { %1016 = dma.done.wait [#allocation3], 4096  }
  0x35   :  { %1017 = vsyncadd [#allocation3], 4294963200 }
  0x36   :  { %1018 = dma.done.wait [#allocation6], 10240  }
  0x37   :  { %1019 = vsyncadd [#allocation6], 4294957056  ;;  %v91_v0 = vld [vmem:[#allocation5] sm:$0xff]  ;;  %v92_v1 = vld [vmem:[#allocation5 + $0x8] sm:$0xff]  ;;  %v1029_v56 = vmov 0.0|0.0  }
  0x38   :  { %v93_v2 = vld [vmem:[#allocation5 + $0x10] sm:$0xff]  ;;  %v807_v3 = vpack.c.bf16 %v92_v1, %v91_v0  ;;  %v94_v4 = vld [vmem:[#allocation5 + $0x18] sm:$0xff]  ;;  %v95_v6 = vld [vmem:[#allocation5 + $0x20] sm:$0xff]  ;;  %887 = vmatprep.subr.bf16.mxu1 %v1029_v56 }
  0x39   :  { %v811_v5 = vpack.c.bf16 %v94_v4, %v93_v2  ;;  %v96_v7 = vld [vmem:[#allocation5 + $0x28] sm:$0xff]  ;;  %v59_v9 = vld [vmem:[#allocation2] sm:$0xff]  ;;  %v97_v10 = vld [vmem:[#allocation5 + $0x30] sm:$0xff] }
  0x3a   :  { %808 = vmatprep.subr.bf16.mxu0 %v807_v3  ;;  %v815_v8 = vpack.c.bf16 %v96_v7, %v95_v6  ;;  %v98_v11 = vld [vmem:[#allocation5 + $0x38] sm:$0xff]  ;;  %759 = vmatprep.mubr.f32.mxu0 %v59_v9  ;;  %v99_v13 = vld [vmem:[#allocation5 + $0x40] sm:$0xff]  ;;  %v100_v14 = vld [vmem:[#allocation5 + $0x48] sm:$0xff] }
  0x3b   :  { %810 = vmatpush3.bf16.msra.mxu0 %v807_v3  ;;  %v819_v12 = vpack.c.bf16 %v98_v11, %v97_v10  ;;  %v823_v15 = vpack.c.bf16 %v100_v14, %v99_v13  ;;  %v101_v16 = vld [vmem:[#allocation5 + $0x50] sm:$0xff]  ;;  %v102_v17 = vld [vmem:[#allocation5 + $0x58] sm:$0xff]  ;;  %v103_v19 = vld [vmem:[#allocation5 + $0x60] sm:$0xff] }
  0x3c   :  { %812 = vmatprep.subr.bf16.mxu0 %v811_v5  ;;  %v827_v18 = vpack.c.bf16 %v102_v17, %v101_v16  ;;  %v104_v20 = vld [vmem:[#allocation5 + $0x68] sm:$0xff]  ;;  %v105_v22 = vld [vmem:[#allocation5 + $0x70] sm:$0xff]  ;;  %v106_v23 = vld [vmem:[#allocation5 + $0x78] sm:$0xff] }
  0x3d   :  { %v831_v21 = vpack.c.bf16 %v104_v20, %v103_v19  ;;  %v835_v24 = vpack.c.bf16 %v106_v23, %v105_v22  ;;  %v60_v25 = vld [vmem:[#allocation2 + $0x8] sm:$0xff]  ;;  %v61_v26 = vld [vmem:[#allocation2 + $0x10] sm:$0xff]  ;;  %v62_v27 = vld [vmem:[#allocation2 + $0x18] sm:$0xff] }
  0x3e   :  { %v63_v28 = vld [vmem:[#allocation2 + $0x20] sm:$0xff]  ;;  %v64_v29 = vld [vmem:[#allocation2 + $0x28] sm:$0xff]  ;;  %v65_v30 = vld [vmem:[#allocation2 + $0x30] sm:$0xff] }
  0x3f   :  { %814 = vmatpush3.bf16.msra.mxu0 %v811_v5  ;;  %v66_v31 = vld [vmem:[#allocation2 + $0x38] sm:$0xff]  ;;  %v67_v32 = vld [vmem:[#allocation2 + $0x40] sm:$0xff]  ;;  %v68_v33 = vld [vmem:[#allocation2 + $0x48] sm:$0xff] }
  0x40   :  { %816 = vmatprep.subr.bf16.mxu0 %v815_v8  ;;  %v69_v34 = vld [vmem:[#allocation2 + $0x50] sm:$0xff]  ;;  %v70_v35 = vld [vmem:[#allocation2 + $0x58] sm:$0xff]  ;;  %v71_v36 = vld [vmem:[#allocation2 + $0x60] sm:$0xff] }
  0x41   :  { %v72_v37 = vld [vmem:[#allocation2 + $0x68] sm:$0xff]  ;;  %v73_v38 = vld [vmem:[#allocation2 + $0x70] sm:$0xff]  ;;  %v74_v39 = vld [vmem:[#allocation2 + $0x78] sm:$0xff] }
  0x42   :  { %v75_v40 = vld [vmem:[#allocation2 + $0x80] sm:$0xff]  ;;  %v76_v41 = vld [vmem:[#allocation2 + $0x88] sm:$0xff]  ;;  %v77_v42 = vld [vmem:[#allocation2 + $0x90] sm:$0xff] }
  0x43   :  { %818 = vmatpush3.bf16.msra.mxu0 %v815_v8  ;;  %v78_v43 = vld [vmem:[#allocation2 + $0x98] sm:$0xff]  ;;  %v79_v44 = vld [vmem:[#allocation2 + $0xa0] sm:$0xff]  ;;  %v80_v45 = vld [vmem:[#allocation2 + $0xa8] sm:$0xff] }
  0x44   :  { %820 = vmatprep.subr.bf16.mxu0 %v819_v12  ;;  %v81_v46 = vld [vmem:[#allocation2 + $0xb0] sm:$0xff]  ;;  %v82_v47 = vld [vmem:[#allocation2 + $0xb8] sm:$0xff]  ;;  %v83_v48 = vld [vmem:[#allocation2 + $0xc0] sm:$0xff] }
  0x45   :  { %v84_v49 = vld [vmem:[#allocation2 + $0xc8] sm:$0xff]  ;;  %v85_v50 = vld [vmem:[#allocation2 + $0xd0] sm:$0xff]  ;;  %v86_v51 = vld [vmem:[#allocation2 + $0xd8] sm:$0xff] }
  0x46   :  { %v87_v52 = vld [vmem:[#allocation2 + $0xe0] sm:$0xff]  ;;  %v88_v53 = vld [vmem:[#allocation2 + $0xe8] sm:$0xff]  ;;  %v89_v54 = vld [vmem:[#allocation2 + $0xf0] sm:$0xff] }
  0x47   :  { %822 = vmatpush3.bf16.msra.mxu0 %v819_v12  ;;  %v90_v55 = vld [vmem:[#allocation2 + $0xf8] sm:$0xff]  ;;  %v357_v57 = vld [vmem:[#allocation7 + $0xc8] sm:$0xff] }
  0x48   :  { %824 = vmatprep.subr.bf16.mxu0 %v823_v15  ;;  %527 = vmatprep.mubr.f32.mxu1 %v357_v57  ;;  %v333_v58 = vld [vmem:[#allocation7 + $0x8] sm:$0xff] }
  0x49   :  { %v365_v57 = vld [vmem:[#allocation7 + $0x108] sm:$0xff] }
  0x4b   :  { %826 = vmatpush3.bf16.msra.mxu0 %v823_v15 }
  0x4c   :  { %828 = vmatprep.subr.bf16.mxu0 %v827_v18 }
  0x4f   :  { %830 = vmatpush3.bf16.msra.mxu0 %v827_v18 }
  0x50   :  { %832 = vmatprep.subr.bf16.mxu0 %v831_v21 }
  0x53   :  { %834 = vmatpush3.bf16.msra.mxu0 %v831_v21 }
  0x54   :  { %836 = vmatprep.subr.bf16.mxu0 %v835_v24 }
  0x57   :  { %838 = vmatpush3.bf16.msra.mxu0 %v835_v24 }
  0x58   :  { %839 = vmatprep.subr.bf16.mxu0 %v1029_v56 }
  0x5a   :  { %760 = vmatmul.mubr.f32.vlgmr.msra.gmra.mrb[0].mxu0 %v60_v25 }
  0x5b   :  { %762 = vmatprep.mubr.f32.mxu0 %v61_v26 }
  0x5e   :  { %763 = vmatmul.mubr.f32.gmra.mrb[2].mxu0 %v62_v27 }
  0x5f   :  { %765 = vmatprep.mubr.f32.mxu0 %v63_v28 }
  0x62   :  { %766 = vmatmul.mubr.f32.gmra.mrb[4].mxu0 %v64_v29 }
  0x63   :  { %768 = vmatprep.mubr.f32.mxu0 %v65_v30 }
  0x66   :  { %769 = vmatmul.mubr.f32.gmra.mrb[6].mxu0 %v66_v31 }
  0x67   :  { %771 = vmatprep.mubr.f32.mxu0 %v67_v32 }
  0x6a   :  { %772 = vmatmul.mubr.f32.gmra.mrb[8].mxu0 %v68_v33 }
  0x6b   :  { %774 = vmatprep.mubr.f32.mxu0 %v69_v34 }
  0x6e   :  { %775 = vmatmul.mubr.f32.gmra.mrb[10].mxu0 %v70_v35 }
  0x6f   :  { %777 = vmatprep.mubr.f32.mxu0 %v71_v36 }
  0x72   :  { %778 = vmatmul.mubr.f32.gmra.mrb[12].mxu0 %v72_v37 }
  0x73   :  { %780 = vmatprep.mubr.f32.mxu0 %v73_v38 }
  0x76   :  { %781 = vmatmul.mubr.f32.gmra.mrb[14].mxu0 %v74_v39 }
  0x77   :  { %783 = vmatprep.mubr.f32.mxu0 %v75_v40 }
  0x7a   :  { %784 = vmatmul.mubr.f32.gmra.mrb[16].mxu0 %v76_v41 }
  0x7b   :  { %786 = vmatprep.mubr.f32.mxu0 %v77_v42 }
  0x7e   :  { %787 = vmatmul.mubr.f32.gmra.mrb[18].mxu0 %v78_v43  ;;  %v356_v43 = vld [vmem:[#allocation7 + $0xc0] sm:$0xff] }
  0x7f   :  { %789 = vmatprep.mubr.f32.mxu0 %v79_v44  ;;  %v332_v44 = vld [vmem:[#allocation7] sm:$0xff] }
  0x82   :  { %790 = vmatmul.mubr.f32.gmra.mrb[20].mxu0 %v80_v45  ;;  %v359_v45 = vld [vmem:[#allocation7 + $0xd8] sm:$0xff] }
  0x83   :  { %792 = vmatprep.mubr.f32.mxu0 %v81_v46  ;;  %v335_v46 = vld [vmem:[#allocation7 + $0x18] sm:$0xff] }
  0x86   :  { %793 = vmatmul.mubr.f32.gmra.mrb[22].mxu0 %v82_v47  ;;  %v358_v47 = vld [vmem:[#allocation7 + $0xd0] sm:$0xff] }
  0x87   :  { %795 = vmatprep.mubr.f32.mxu0 %v83_v48  ;;  %v334_v48 = vld [vmem:[#allocation7 + $0x10] sm:$0xff] }
  0x8a   :  { %796 = vmatmul.mubr.f32.gmra.mrb[24].mxu0 %v84_v49  ;;  %v361_v49 = vld [vmem:[#allocation7 + $0xe8] sm:$0xff] }
  0x8b   :  { %798 = vmatprep.mubr.f32.mxu0 %v85_v50  ;;  %v337_v50 = vld [vmem:[#allocation7 + $0x28] sm:$0xff] }
  0x8e   :  { %799 = vmatmul.mubr.f32.gmra.mrb[26].mxu0 %v86_v51  ;;  %v360_v51 = vld [vmem:[#allocation7 + $0xe0] sm:$0xff] }
  0x8f   :  { %801 = vmatprep.mubr.f32.mxu0 %v87_v52  ;;  %v336_v52 = vld [vmem:[#allocation7 + $0x20] sm:$0xff] }
  0x92   :  { %802 = vmatmul.mubr.f32.gmra.mrb[28].mxu0 %v88_v53  ;;  %v363_v53 = vld [vmem:[#allocation7 + $0xf8] sm:$0xff] }
  0x93   :  { %804 = vmatprep.mubr.f32.mxu0 %v89_v54  ;;  %v339_v54 = vld [vmem:[#allocation7 + $0x38] sm:$0xff] }
  0x96   :  { %805 = vmatmul.mubr.f32.gmra.mrb[30].mxu0 %v90_v55  ;;  %v362_v55 = vld [vmem:[#allocation7 + $0xf0] sm:$0xff] }
  0x97   :  { %467 = vmatprep.mubr.f32.mxu0 %v333_v58  ;;  %v341_v58 = vld [vmem:[#allocation7 + $0x48] sm:$0xff] }
 0x12d   :  { %v761_v59 = vpop.f32.mrb[0].mxu0 }
 0x12e   :  { %v173_v60 = vpop.f32.mrb[1].mxu0 }
 0x12f   :  { %v840_v61 = vpack.c.bf16 %v761_v59, %v173_v60  ;;  %v364_v59 = vld [vmem:[#allocation7 + $0x100] sm:$0xff] }
 0x130   :  { %v340_v60 = vld [vmem:[#allocation7 + $0x40] sm:$0xff] }
 0x131   :  { %v764_v62 = vpop.f32.mrb[2].mxu0  ;;  %841 = vmatpush1.bf16.msra.mxu0 %v840_v61  ;;  %903 = vmatpush1.bf16.msra.mxu1 %v840_v61  ;;  %v367_v61 = vld [vmem:[#allocation7 + $0x118] sm:$0xff] }
 0x132   :  { %v183_v63 = vpop.f32.mrb[3].mxu0  ;;  %842 = vmatprep.subr.bf16.mxu0 %v1029_v56  ;;  %888 = vmatprep.subr.bf16.mxu1 %v1029_v56 }
 0x133   :  { %v843_v0 = vpack.c.bf16 %v764_v62, %v183_v63  ;;  %v343_v62 = vld [vmem:[#allocation7 + $0x58] sm:$0xff]  ;;  %v366_v63 = vld [vmem:[#allocation7 + $0x110] sm:$0xff] }
 0x135   :  { %v767_v1 = vpop.f32.mrb[4].mxu0  ;;  %844 = vmatpush1.bf16.msra.mxu0 %v843_v0  ;;  %904 = vmatpush1.bf16.msra.mxu1 %v843_v0  ;;  %v342_v0 = vld [vmem:[#allocation7 + $0x50] sm:$0xff] }
 0x136   :  { %v193_v2 = vpop.f32.mrb[5].mxu0  ;;  %845 = vmatprep.subr.bf16.mxu0 %v1029_v56  ;;  %889 = vmatprep.subr.bf16.mxu1 %v1029_v56 }
 0x137   :  { %v846_v3 = vpack.c.bf16 %v767_v1, %v193_v2  ;;  %v369_v1 = vld [vmem:[#allocation7 + $0x128] sm:$0xff] }
 0x138   :  { %v345_v2 = vld [vmem:[#allocation7 + $0x68] sm:$0xff] }
 0x139   :  { %v770_v4 = vpop.f32.mrb[6].mxu0  ;;  %847 = vmatpush1.bf16.msra.mxu0 %v846_v3  ;;  %905 = vmatpush1.bf16.msra.mxu1 %v846_v3  ;;  %v368_v3 = vld [vmem:[#allocation7 + $0x120] sm:$0xff] }
 0x13a   :  { %v203_v5 = vpop.f32.mrb[7].mxu0  ;;  %848 = vmatprep.subr.bf16.mxu0 %v1029_v56  ;;  %890 = vmatprep.subr.bf16.mxu1 %v1029_v56 }
 0x13b   :  { %v849_v6 = vpack.c.bf16 %v770_v4, %v203_v5  ;;  %v344_v4 = vld [vmem:[#allocation7 + $0x60] sm:$0xff]  ;;  %v371_v5 = vld [vmem:[#allocation7 + $0x138] sm:$0xff] }
 0x13d   :  { %v773_v7 = vpop.f32.mrb[8].mxu0  ;;  %850 = vmatpush1.bf16.msra.mxu0 %v849_v6  ;;  %906 = vmatpush1.bf16.msra.mxu1 %v849_v6  ;;  %v347_v6 = vld [vmem:[#allocation7 + $0x78] sm:$0xff] }
 0x13e   :  { %v213_v8 = vpop.f32.mrb[9].mxu0  ;;  %851 = vmatprep.subr.bf16.mxu0 %v1029_v56  ;;  %891 = vmatprep.subr.bf16.mxu1 %v1029_v56 }
 0x13f   :  { %v852_v9 = vpack.c.bf16 %v773_v7, %v213_v8  ;;  %v370_v7 = vld [vmem:[#allocation7 + $0x130] sm:$0xff] }
 0x140   :  { %v346_v8 = vld [vmem:[#allocation7 + $0x70] sm:$0xff] }
 0x141   :  { %v776_v10 = vpop.f32.mrb[10].mxu0  ;;  %853 = vmatpush1.bf16.msra.mxu0 %v852_v9  ;;  %907 = vmatpush1.bf16.msra.mxu1 %v852_v9  ;;  %v373_v9 = vld [vmem:[#allocation7 + $0x148] sm:$0xff] }
 0x142   :  { %v223_v11 = vpop.f32.mrb[11].mxu0  ;;  %854 = vmatprep.subr.bf16.mxu0 %v1029_v56  ;;  %892 = vmatprep.subr.bf16.mxu1 %v1029_v56 }
 0x143   :  { %v855_v12 = vpack.c.bf16 %v776_v10, %v223_v11  ;;  %v349_v10 = vld [vmem:[#allocation7 + $0x88] sm:$0xff]  ;;  %v372_v11 = vld [vmem:[#allocation7 + $0x140] sm:$0xff] }
 0x145   :  { %v779_v13 = vpop.f32.mrb[12].mxu0  ;;  %856 = vmatpush1.bf16.msra.mxu0 %v855_v12  ;;  %908 = vmatpush1.bf16.msra.mxu1 %v855_v12  ;;  %v348_v12 = vld [vmem:[#allocation7 + $0x80] sm:$0xff] }
 0x146   :  { %v233_v14 = vpop.f32.mrb[13].mxu0  ;;  %857 = vmatprep.subr.bf16.mxu0 %v1029_v56  ;;  %893 = vmatprep.subr.bf16.mxu1 %v1029_v56 }
 0x147   :  { %v858_v15 = vpack.c.bf16 %v779_v13, %v233_v14  ;;  %v375_v13 = vld [vmem:[#allocation7 + $0x158] sm:$0xff] }
 0x148   :  { %v351_v14 = vld [vmem:[#allocation7 + $0x98] sm:$0xff] }
 0x149   :  { %v782_v16 = vpop.f32.mrb[14].mxu0  ;;  %859 = vmatpush1.bf16.msra.mxu0 %v858_v15  ;;  %909 = vmatpush1.bf16.msra.mxu1 %v858_v15  ;;  %v374_v15 = vld [vmem:[#allocation7 + $0x150] sm:$0xff] }
 0x14a   :  { %v243_v17 = vpop.f32.mrb[15].mxu0  ;;  %860 = vmatprep.subr.bf16.mxu0 %v1029_v56  ;;  %894 = vmatprep.subr.bf16.mxu1 %v1029_v56 }
 0x14b   :  { %v861_v18 = vpack.c.bf16 %v782_v16, %v243_v17  ;;  %v350_v16 = vld [vmem:[#allocation7 + $0x90] sm:$0xff]  ;;  %v377_v17 = vld [vmem:[#allocation7 + $0x168] sm:$0xff] }
 0x14d   :  { %v785_v19 = vpop.f32.mrb[16].mxu0  ;;  %862 = vmatpush1.bf16.msra.mxu0 %v861_v18  ;;  %910 = vmatpush1.bf16.msra.mxu1 %v861_v18  ;;  %v353_v18 = vld [vmem:[#allocation7 + $0xa8] sm:$0xff] }
 0x14e   :  { %v253_v20 = vpop.f32.mrb[17].mxu0  ;;  %863 = vmatprep.subr.bf16.mxu0 %v1029_v56  ;;  %895 = vmatprep.subr.bf16.mxu1 %v1029_v56 }
 0x14f   :  { %v864_v21 = vpack.c.bf16 %v785_v19, %v253_v20  ;;  %v376_v19 = vld [vmem:[#allocation7 + $0x160] sm:$0xff] }
 0x150   :  { %v352_v20 = vld [vmem:[#allocation7 + $0xa0] sm:$0xff] }
 0x151   :  { %v788_v22 = vpop.f32.mrb[18].mxu0  ;;  %865 = vmatpush1.bf16.msra.mxu0 %v864_v21  ;;  %911 = vmatpush1.bf16.msra.mxu1 %v864_v21  ;;  %v379_v21 = vld [vmem:[#allocation7 + $0x178] sm:$0xff] }
 0x152   :  { %v263_v23 = vpop.f32.mrb[19].mxu0  ;;  %866 = vmatprep.subr.bf16.mxu0 %v1029_v56  ;;  %896 = vmatprep.subr.bf16.mxu1 %v1029_v56 }
 0x153   :  { %v867_v24 = vpack.c.bf16 %v788_v22, %v263_v23  ;;  %v355_v22 = vld [vmem:[#allocation7 + $0xb8] sm:$0xff]  ;;  %v378_v23 = vld [vmem:[#allocation7 + $0x170] sm:$0xff] }
 0x155   :  { %v791_v25 = vpop.f32.mrb[20].mxu0  ;;  %868 = vmatpush1.bf16.msra.mxu0 %v867_v24  ;;  %912 = vmatpush1.bf16.msra.mxu1 %v867_v24  ;;  %v354_v24 = vld [vmem:[#allocation7 + $0xb0] sm:$0xff] }
 0x156   :  { %v273_v26 = vpop.f32.mrb[21].mxu0  ;;  %869 = vmatprep.subr.bf16.mxu0 %v1029_v56  ;;  %897 = vmatprep.subr.bf16.mxu1 %v1029_v56 }
 0x157   :  { %v870_v27 = vpack.c.bf16 %v791_v25, %v273_v26  ;;  %v381_v25 = vld [vmem:[#allocation7 + $0x188] sm:$0xff]  ;;  %v380_v26 = vld [vmem:[#allocation7 + $0x180] sm:$0xff] }
 0x159   :  { %v794_v28 = vpop.f32.mrb[22].mxu0  ;;  %871 = vmatpush1.bf16.msra.mxu0 %v870_v27  ;;  %913 = vmatpush1.bf16.msra.mxu1 %v870_v27  ;;  %v383_v27 = vld [vmem:[#allocation7 + $0x198] sm:$0xff] }
 0x15a   :  { %v283_v29 = vpop.f32.mrb[23].mxu0  ;;  %872 = vmatprep.subr.bf16.mxu0 %v1029_v56  ;;  %898 = vmatprep.subr.bf16.mxu1 %v1029_v56 }
 0x15b   :  { %v873_v30 = vpack.c.bf16 %v794_v28, %v283_v29  ;;  %v382_v28 = vld [vmem:[#allocation7 + $0x190] sm:$0xff]  ;;  %v385_v29 = vld [vmem:[#allocation7 + $0x1a8] sm:$0xff] }
 0x15d   :  { %v797_v31 = vpop.f32.mrb[24].mxu0  ;;  %874 = vmatpush1.bf16.msra.mxu0 %v873_v30  ;;  %914 = vmatpush1.bf16.msra.mxu1 %v873_v30  ;;  %v384_v30 = vld [vmem:[#allocation7 + $0x1a0] sm:$0xff] }
 0x15e   :  { %v293_v32 = vpop.f32.mrb[25].mxu0  ;;  %875 = vmatprep.subr.bf16.mxu0 %v1029_v56  ;;  %899 = vmatprep.subr.bf16.mxu1 %v1029_v56 }
 0x15f   :  { %v876_v33 = vpack.c.bf16 %v797_v31, %v293_v32  ;;  %v387_v31 = vld [vmem:[#allocation7 + $0x1b8] sm:$0xff]  ;;  %v386_v32 = vld [vmem:[#allocation7 + $0x1b0] sm:$0xff] }
 0x161   :  { %v800_v34 = vpop.f32.mrb[26].mxu0  ;;  %877 = vmatpush1.bf16.msra.mxu0 %v876_v33  ;;  %915 = vmatpush1.bf16.msra.mxu1 %v876_v33  ;;  %v389_v33 = vld [vmem:[#allocation7 + $0x1c8] sm:$0xff] }
 0x162   :  { %v303_v35 = vpop.f32.mrb[27].mxu0  ;;  %878 = vmatprep.subr.bf16.mxu0 %v1029_v56  ;;  %900 = vmatprep.subr.bf16.mxu1 %v1029_v56 }
 0x163   :  { %v879_v36 = vpack.c.bf16 %v800_v34, %v303_v35  ;;  %v388_v34 = vld [vmem:[#allocation7 + $0x1c0] sm:$0xff]  ;;  %v391_v35 = vld [vmem:[#allocation7 + $0x1d8] sm:$0xff] }
 0x165   :  { %v803_v37 = vpop.f32.mrb[28].mxu0  ;;  %880 = vmatpush1.bf16.msra.mxu0 %v879_v36  ;;  %916 = vmatpush1.bf16.msra.mxu1 %v879_v36  ;;  %v390_v36 = vld [vmem:[#allocation7 + $0x1d0] sm:$0xff] }
 0x166   :  { %v313_v38 = vpop.f32.mrb[29].mxu0  ;;  %881 = vmatprep.subr.bf16.mxu0 %v1029_v56  ;;  %901 = vmatprep.subr.bf16.mxu1 %v1029_v56 }
 0x167   :  { %v882_v39 = vpack.c.bf16 %v803_v37, %v313_v38  ;;  %v393_v37 = vld [vmem:[#allocation7 + $0x1e8] sm:$0xff]  ;;  %v392_v38 = vld [vmem:[#allocation7 + $0x1e0] sm:$0xff] }
 0x169   :  { %v806_v40 = vpop.f32.mrb[30].mxu0  ;;  %883 = vmatpush1.bf16.msra.mxu0 %v882_v39  ;;  %917 = vmatpush1.bf16.msra.mxu1 %v882_v39  ;;  %v395_v39 = vld [vmem:[#allocation7 + $0x1f8] sm:$0xff] }
 0x16a   :  { %v323_v41 = vpop.f32.mrb[31].mxu0  ;;  %884 = vmatprep.subr.bf16.mxu0 %v1029_v56  ;;  %902 = vmatprep.subr.bf16.mxu1 %v1029_v56  ;;  %v338_v56 = vld [vmem:[#allocation7 + $0x30] sm:$0xff] }
 0x16b   :  { %v885_v42 = vpack.c.bf16 %v806_v40, %v323_v41  ;;  %v394_v40 = vld [vmem:[#allocation7 + $0x1f0] sm:$0xff]  ;;  %v1140_v41 = vld [vmem:[%s1192_s3] ss:$0 sm:$0xff]  ;;  %s1030_s3 = smov [#allocation8]  }
 0x16c   :  { %s665_s30 = sshll.u32 %s1030_s3, 4  ;;  %s666_s30 = int_to_ptr.vmem [resolvable:$true] %s665_s30 }
 0x16d   :  { %886 = vmatpush1.bf16.msra.mxu0 %v885_v42  ;;  %918 = vmatpush1.bf16.msra.mxu1 %v885_v42  ;;  %s994_s5 = scalar_lea.vmem %s666_s30, 4096  ;;  %p999_p11 = scmp.lt.s32.totalorder %s666_s30, %s666_s30 }
 0x16e   :  { %p995_p10 = scmp.ne.s32.totalorder %s666_s30, %s994_s5  ;;  %p1000_p12 = scmp.lt.s32.totalorder %s994_s5, %s994_s5 }
 0x170   :  { %528 = vmatmul.mubr.f32.vlgmr.msra.gmra.mrb[0].mxu1 %v356_v43  ;;  %468 = vmatmul.mubr.f32.vlgmr.msra.gmra.mrb[32].mxu0 %v332_v44  ;;  %p1001_p13 = por %p1000_p12, %p999_p11 }
 0x171   :  { %532 = vmatprep.mubr.f32.mxu1 %v359_v45  ;;  %472 = vmatprep.mubr.f32.mxu0 %v335_v46 }
 0x172   :  { %p1002_p0 = pnand %p1001_p13, %p995_p10 }
 0x174   :  { %533 = vmatmul.mubr.f32.gmra.mrb[2].mxu1 %v358_v47  ;;  %473 = vmatmul.mubr.f32.gmra.mrb[34].mxu0 %v334_v48 }
 0x175   :  { %537 = vmatprep.mubr.f32.mxu1 %v361_v49  ;;  %477 = vmatprep.mubr.f32.mxu0 %v337_v50 }
 0x178   :  { %538 = vmatmul.mubr.f32.gmra.mrb[4].mxu1 %v360_v51  ;;  %478 = vmatmul.mubr.f32.gmra.mrb[36].mxu0 %v336_v52 }
 0x179   :  { %542 = vmatprep.mubr.f32.mxu1 %v363_v53  ;;  %482 = vmatprep.mubr.f32.mxu0 %v339_v54 }
 0x17c   :  { %543 = vmatmul.mubr.f32.gmra.mrb[6].mxu1 %v362_v55  ;;  %483 = vmatmul.mubr.f32.gmra.mrb[38].mxu0 %v338_v56 }
 0x17d   :  { %547 = vmatprep.mubr.f32.mxu1 %v365_v57  ;;  %487 = vmatprep.mubr.f32.mxu0 %v341_v58 }
 0x180   :  { %548 = vmatmul.mubr.f32.gmra.mrb[8].mxu1 %v364_v59  ;;  %488 = vmatmul.mubr.f32.gmra.mrb[40].mxu0 %v340_v60 }
 0x181   :  { %552 = vmatprep.mubr.f32.mxu1 %v367_v61  ;;  %492 = vmatprep.mubr.f32.mxu0 %v343_v62 }
 0x184   :  { %553 = vmatmul.mubr.f32.gmra.mrb[10].mxu1 %v366_v63  ;;  %493 = vmatmul.mubr.f32.gmra.mrb[42].mxu0 %v342_v0 }
 0x185   :  { %557 = vmatprep.mubr.f32.mxu1 %v369_v1  ;;  %497 = vmatprep.mubr.f32.mxu0 %v345_v2 }
 0x188   :  { %558 = vmatmul.mubr.f32.gmra.mrb[12].mxu1 %v368_v3  ;;  %498 = vmatmul.mubr.f32.gmra.mrb[44].mxu0 %v344_v4 }
 0x189   :  { %562 = vmatprep.mubr.f32.mxu1 %v371_v5  ;;  %502 = vmatprep.mubr.f32.mxu0 %v347_v6 }
 0x18c   :  { %563 = vmatmul.mubr.f32.gmra.mrb[14].mxu1 %v370_v7  ;;  %503 = vmatmul.mubr.f32.gmra.mrb[46].mxu0 %v346_v8 }
 0x18d   :  { %567 = vmatprep.mubr.f32.mxu1 %v373_v9  ;;  %507 = vmatprep.mubr.f32.mxu0 %v349_v10 }
 0x190   :  { %568 = vmatmul.mubr.f32.gmra.mrb[16].mxu1 %v372_v11  ;;  %508 = vmatmul.mubr.f32.gmra.mrb[48].mxu0 %v348_v12 }
 0x191   :  { %572 = vmatprep.mubr.f32.mxu1 %v375_v13  ;;  %512 = vmatprep.mubr.f32.mxu0 %v351_v14 }
 0x194   :  { %573 = vmatmul.mubr.f32.gmra.mrb[18].mxu1 %v374_v15  ;;  %513 = vmatmul.mubr.f32.gmra.mrb[50].mxu0 %v350_v16 }
 0x195   :  { %577 = vmatprep.mubr.f32.mxu1 %v377_v17  ;;  %517 = vmatprep.mubr.f32.mxu0 %v353_v18 }
 0x198   :  { %578 = vmatmul.mubr.f32.gmra.mrb[20].mxu1 %v376_v19  ;;  %518 = vmatmul.mubr.f32.gmra.mrb[52].mxu0 %v352_v20 }
 0x199   :  { %582 = vmatprep.mubr.f32.mxu1 %v379_v21  ;;  %522 = vmatprep.mubr.f32.mxu0 %v355_v22 }
 0x19c   :  { %583 = vmatmul.mubr.f32.gmra.mrb[22].mxu1 %v378_v23  ;;  %523 = vmatmul.mubr.f32.gmra.mrb[54].mxu0 %v354_v24 }
 0x19d   :  { %587 = vmatprep.mubr.f32.mxu1 %v381_v25 }
 0x1a0   :  { %588 = vmatmul.mubr.f32.gmra.mrb[24].mxu1 %v380_v26 }
 0x1a1   :  { %592 = vmatprep.mubr.f32.mxu1 %v383_v27 }
 0x1a4   :  { %593 = vmatmul.mubr.f32.gmra.mrb[26].mxu1 %v382_v28 }
 0x1a5   :  { %597 = vmatprep.mubr.f32.mxu1 %v385_v29 }
 0x1a8   :  { %598 = vmatmul.mubr.f32.gmra.mrb[28].mxu1 %v384_v30 }
 0x1a9   :  { %602 = vmatprep.mubr.f32.mxu1 %v387_v31 }
 0x1ac   :  { %603 = vmatmul.mubr.f32.gmra.mrb[30].mxu1 %v386_v32 }
 0x1ad   :  { %607 = vmatprep.mubr.f32.mxu1 %v389_v33 }
 0x1b0   :  { %608 = vmatmul.mubr.f32.gmra.mrb[32].mxu1 %v388_v34 }
 0x1b1   :  { %612 = vmatprep.mubr.f32.mxu1 %v391_v35 }
 0x1b4   :  { %613 = vmatmul.mubr.f32.gmra.mrb[34].mxu1 %v390_v36 }
 0x1b5   :  { %617 = vmatprep.mubr.f32.mxu1 %v393_v37 }
 0x1b8   :  { %618 = vmatmul.mubr.f32.gmra.mrb[36].mxu1 %v392_v38 }
 0x1b9   :  { %622 = vmatprep.mubr.f32.mxu1 %v395_v39 }
 0x1bc   :  { %623 = vmatmul.mubr.f32.gmra.mrb[38].mxu1 %v394_v40 }
 0x243   :  { %v529_v42 = vpop.f32.mrb[0].mxu1  ;;  %v469_v43 = vpop.f32.mrb[32].mxu0 }
 0x244   :  { %v530_v44 = vadd.f32 %v1140_v41, %v529_v42  ;;  %v531_v45 = vpop.f32.mrb[1].mxu1  ;;  %v470_v46 = vadd.f32 %v1140_v41, %v469_v43  ;;  %v471_v47 = vpop.f32.mrb[33].mxu0 }
 0x246   :  { %640 = vst [vmem:[#allocation8 + $0x60] sm:$0xff] %v530_v44  ;;  %628 = vst [vmem:[#allocation8] sm:$0xff] %v470_v46 }
 0x247   :  { %v534_v48 = vpop.f32.mrb[2].mxu1  ;;  %v474_v49 = vpop.f32.mrb[34].mxu0 }
 0x248   :  { %v535_v50 = vadd.f32 %v1140_v41, %v534_v48  ;;  %v536_v51 = vpop.f32.mrb[3].mxu1  ;;  %v475_v52 = vadd.f32 %v1140_v41, %v474_v49  ;;  %v476_v53 = vpop.f32.mrb[35].mxu0 }
 0x24a   :  { %641 = vst [vmem:[#allocation8 + $0x68] sm:$0xff] %v535_v50  ;;  %629 = vst [vmem:[#allocation8 + $0x8] sm:$0xff] %v475_v52 }
 0x24b   :  { %v539_v54 = vpop.f32.mrb[4].mxu1  ;;  %v479_v55 = vpop.f32.mrb[36].mxu0 }
 0x24c   :  { %v540_v56 = vadd.f32 %v1140_v41, %v539_v54  ;;  %v541_v57 = vpop.f32.mrb[5].mxu1  ;;  %v480_v58 = vadd.f32 %v1140_v41, %v479_v55  ;;  %v481_v59 = vpop.f32.mrb[37].mxu0 }
 0x24e   :  { %642 = vst [vmem:[#allocation8 + $0x70] sm:$0xff] %v540_v56  ;;  %630 = vst [vmem:[#allocation8 + $0x10] sm:$0xff] %v480_v58 }
 0x24f   :  { %v544_v60 = vpop.f32.mrb[6].mxu1  ;;  %v484_v61 = vpop.f32.mrb[38].mxu0 }
 0x250   :  { %v545_v62 = vadd.f32 %v1140_v41, %v544_v60  ;;  %v546_v63 = vpop.f32.mrb[7].mxu1  ;;  %v485_v0 = vadd.f32 %v1140_v41, %v484_v61  ;;  %v486_v1 = vpop.f32.mrb[39].mxu0 }
 0x252   :  { %643 = vst [vmem:[#allocation8 + $0x78] sm:$0xff] %v545_v62  ;;  %631 = vst [vmem:[#allocation8 + $0x18] sm:$0xff] %v485_v0 }
 0x253   :  { %v549_v2 = vpop.f32.mrb[8].mxu1  ;;  %v489_v3 = vpop.f32.mrb[40].mxu0 }
 0x254   :  { %v550_v4 = vadd.f32 %v1140_v41, %v549_v2  ;;  %v551_v5 = vpop.f32.mrb[9].mxu1  ;;  %v490_v6 = vadd.f32 %v1140_v41, %v489_v3  ;;  %v491_v7 = vpop.f32.mrb[41].mxu0 }
 0x256   :  { %644 = vst [vmem:[#allocation8 + $0x80] sm:$0xff] %v550_v4  ;;  %632 = vst [vmem:[#allocation8 + $0x20] sm:$0xff] %v490_v6 }
 0x257   :  { %v554_v8 = vpop.f32.mrb[10].mxu1  ;;  %v494_v9 = vpop.f32.mrb[42].mxu0 }
 0x258   :  { %v555_v10 = vadd.f32 %v1140_v41, %v554_v8  ;;  %v556_v11 = vpop.f32.mrb[11].mxu1  ;;  %v495_v12 = vadd.f32 %v1140_v41, %v494_v9  ;;  %v496_v13 = vpop.f32.mrb[43].mxu0 }
 0x25a   :  { %645 = vst [vmem:[#allocation8 + $0x88] sm:$0xff] %v555_v10  ;;  %633 = vst [vmem:[#allocation8 + $0x28] sm:$0xff] %v495_v12 }
 0x25b   :  { %v559_v14 = vpop.f32.mrb[12].mxu1  ;;  %v499_v15 = vpop.f32.mrb[44].mxu0 }
 0x25c   :  { %v560_v16 = vadd.f32 %v1140_v41, %v559_v14  ;;  %v561_v17 = vpop.f32.mrb[13].mxu1  ;;  %v500_v18 = vadd.f32 %v1140_v41, %v499_v15  ;;  %v501_v19 = vpop.f32.mrb[45].mxu0 }
 0x25e   :  { %646 = vst [vmem:[#allocation8 + $0x90] sm:$0xff] %v560_v16  ;;  %634 = vst [vmem:[#allocation8 + $0x30] sm:$0xff] %v500_v18 }
 0x25f   :  { %v564_v20 = vpop.f32.mrb[14].mxu1  ;;  %v504_v21 = vpop.f32.mrb[46].mxu0 }
 0x260   :  { %v565_v22 = vadd.f32 %v1140_v41, %v564_v20  ;;  %v566_v23 = vpop.f32.mrb[15].mxu1  ;;  %v505_v24 = vadd.f32 %v1140_v41, %v504_v21  ;;  %v506_v25 = vpop.f32.mrb[47].mxu0 }
 0x262   :  { %647 = vst [vmem:[#allocation8 + $0x98] sm:$0xff] %v565_v22  ;;  %635 = vst [vmem:[#allocation8 + $0x38] sm:$0xff] %v505_v24 }
 0x263   :  { %v569_v26 = vpop.f32.mrb[16].mxu1  ;;  %v509_v27 = vpop.f32.mrb[48].mxu0 }
 0x264   :  { %v570_v28 = vadd.f32 %v1140_v41, %v569_v26  ;;  %v571_v29 = vpop.f32.mrb[17].mxu1  ;;  %v510_v30 = vadd.f32 %v1140_v41, %v509_v27  ;;  %v511_v31 = vpop.f32.mrb[49].mxu0 }
 0x266   :  { %648 = vst [vmem:[#allocation8 + $0xa0] sm:$0xff] %v570_v28  ;;  %636 = vst [vmem:[#allocation8 + $0x40] sm:$0xff] %v510_v30 }
 0x267   :  { %v574_v32 = vpop.f32.mrb[18].mxu1  ;;  %v514_v33 = vpop.f32.mrb[50].mxu0 }
 0x268   :  { %v575_v34 = vadd.f32 %v1140_v41, %v574_v32  ;;  %v576_v35 = vpop.f32.mrb[19].mxu1  ;;  %v515_v36 = vadd.f32 %v1140_v41, %v514_v33  ;;  %v516_v37 = vpop.f32.mrb[51].mxu0 }
 0x26a   :  { %649 = vst [vmem:[#allocation8 + $0xa8] sm:$0xff] %v575_v34  ;;  %637 = vst [vmem:[#allocation8 + $0x48] sm:$0xff] %v515_v36 }
 0x26b   :  { %v579_v38 = vpop.f32.mrb[20].mxu1  ;;  %v519_v39 = vpop.f32.mrb[52].mxu0 }
 0x26c   :  { %v580_v40 = vadd.f32 %v1140_v41, %v579_v38  ;;  %v581_v42 = vpop.f32.mrb[21].mxu1  ;;  %v520_v43 = vadd.f32 %v1140_v41, %v519_v39  ;;  %v521_v44 = vpop.f32.mrb[53].mxu0 }
 0x26e   :  { %650 = vst [vmem:[#allocation8 + $0xb0] sm:$0xff] %v580_v40  ;;  %638 = vst [vmem:[#allocation8 + $0x50] sm:$0xff] %v520_v43 }
 0x26f   :  { %v584_v45 = vpop.f32.mrb[22].mxu1  ;;  %v524_v46 = vpop.f32.mrb[54].mxu0 }
 0x270   :  { %v585_v47 = vadd.f32 %v1140_v41, %v584_v45  ;;  %v586_v48 = vpop.f32.mrb[23].mxu1  ;;  %v525_v49 = vadd.f32 %v1140_v41, %v524_v46  ;;  %v526_v50 = vpop.f32.mrb[55].mxu0 }
 0x272   :  { %651 = vst [vmem:[#allocation8 + $0xb8] sm:$0xff] %v585_v47  ;;  %639 = vst [vmem:[#allocation8 + $0x58] sm:$0xff] %v525_v49 }
 0x273   :  { %v589_v51 = vpop.f32.mrb[24].mxu1 }
 0x274   :  { %v590_v52 = vadd.f32 %v1140_v41, %v589_v51  ;;  %v591_v53 = vpop.f32.mrb[25].mxu1 }
 0x276   :  { %652 = vst [vmem:[#allocation8 + $0xc0] sm:$0xff] %v590_v52 }
 0x277   :  { %v594_v54 = vpop.f32.mrb[26].mxu1 }
 0x278   :  { %v595_v55 = vadd.f32 %v1140_v41, %v594_v54  ;;  %v596_v56 = vpop.f32.mrb[27].mxu1 }
 0x27a   :  { %653 = vst [vmem:[#allocation8 + $0xc8] sm:$0xff] %v595_v55 }
 0x27b   :  { %v599_v57 = vpop.f32.mrb[28].mxu1 }
 0x27c   :  { %v600_v58 = vadd.f32 %v1140_v41, %v599_v57  ;;  %v601_v59 = vpop.f32.mrb[29].mxu1 }
 0x27e   :  { %654 = vst [vmem:[#allocation8 + $0xd0] sm:$0xff] %v600_v58 }
 0x27f   :  { %v604_v60 = vpop.f32.mrb[30].mxu1 }
 0x280   :  { %v605_v61 = vadd.f32 %v1140_v41, %v604_v60  ;;  %v606_v62 = vpop.f32.mrb[31].mxu1 }
 0x282   :  { %655 = vst [vmem:[#allocation8 + $0xd8] sm:$0xff] %v605_v61 }
 0x283   :  { %v609_v63 = vpop.f32.mrb[32].mxu1 }
 0x284   :  { %v610_v0 = vadd.f32 %v1140_v41, %v609_v63  ;;  %v611_v1 = vpop.f32.mrb[33].mxu1 }
 0x286   :  { %656 = vst [vmem:[#allocation8 + $0xe0] sm:$0xff] %v610_v0 }
 0x287   :  { %v614_v2 = vpop.f32.mrb[34].mxu1 }
 0x288   :  { %v615_v3 = vadd.f32 %v1140_v41, %v614_v2  ;;  %v616_v4 = vpop.f32.mrb[35].mxu1 }
 0x28a   :  { %657 = vst [vmem:[#allocation8 + $0xe8] sm:$0xff] %v615_v3 }
 0x28b   :  { %v619_v5 = vpop.f32.mrb[36].mxu1 }
 0x28c   :  { %v620_v6 = vadd.f32 %v1140_v41, %v619_v5  ;;  %v621_v7 = vpop.f32.mrb[37].mxu1 }
 0x28e   :  { %658 = vst [vmem:[#allocation8 + $0xf0] sm:$0xff] %v620_v6 }
 0x28f   :  { %v624_v8 = vpop.f32.mrb[38].mxu1 }
 0x290   :  { %v625_v9 = vadd.f32 %v1140_v41, %v624_v8  ;;  %v626_v10 = vpop.f32.mrb[39].mxu1 }
 0x292   :  { %659 = vst [vmem:[#allocation8 + $0xf8] sm:$0xff] %v625_v9 }
 0x293   :  { %1005 = shalt.err (!%p1002_p0)
}
 0x294   :  { %s1006_s8 = scalar_lea.hbm %s1193_s4, 4096 }
 0x295   :  { %p1007_p1 = scmp.ne.s32.totalorder %s1193_s4, %s1006_s8  ;;  %p1010_p2 = scmp.lt.u32.totalorder %s1006_s8, %s1193_s4 }
 0x297   :  { %p1012_p3 = pnand %p1010_p2, %p1007_p1 }
 0x299   :  { %1015 = shalt.err (!%p1012_p3)
}
 0x29a   :  { %671 = dma.vmem_to_hbm [thread:$0]  %s666_s30, 4096, %s1193_s4, [#allocation4], %s1024_s27, %s1024_s27, %s1025_s28  }
 0x29b   :  { %1020 = dma.done.wait [#allocation4], 4096  }
 0x29c   :  { %1021 = vsyncadd [#allocation4], 4294963200 }
 0x29d   :  { %675 = vsyncpa [#allocation3], 1 }
 0x29e   :  { %676 = vsyncpa [#allocation6], 1 }
 0x29f   :  { %677 = vsyncpa [#allocation4], 1 }

</bundles_post_ra>
